<compile_context>
chip_gen: v7x
topology: tpu7x:2x2x1
jax: 0.10.0
libtpu: 0.0.40
codegen_flags: <defaults>
</compile_context>

<pallas_src>
import jax
import jax.numpy as jnp
import numpy as np
from jax.experimental import pallas as pl
from jax.experimental.pallas import tpu as pltpu

LANE = 128  # lane-dense feature width


def _hardswish(x):
    # PyTorch nn.Hardswish: x * relu6(x + 3) / 6
    return x * jnp.clip(x + 3.0, 0.0, 6.0) * (1.0 / 6.0)


def critic_twin_kernel(s_ref, a_ref, w1s_ref, w1a_ref, b1_ref,
                       w2_ref, b2_ref, w3_ref, b3_ref,
                       wq_ref, bq_ref, out_ref):
    # In-kernel f32 -> bf16 cast (keeps host-side free of convert ops).
    s = s_ref[...].astype(jnp.bfloat16)              # [TILE_B, S]
    a = a_ref[...].astype(jnp.bfloat16)              # [TILE_B, A]

    # Fused concat: x @ W1 == s @ W1[:S] + a @ W1[S:]   (bf16 MXU, f32 acc)
    z1 = (jnp.dot(s, w1s_ref[...], preferred_element_type=jnp.float32)
          + jnp.dot(a, w1a_ref[...], preferred_element_type=jnp.float32)
          + b1_ref[...])
    h1 = jnp.maximum(z1, 0.0)                        # ReLU in f32

    z2 = jnp.dot(h1.astype(jnp.bfloat16), w2_ref[...],
                 preferred_element_type=jnp.float32) + b2_ref[...]
    h2 = jnp.maximum(z2, 0.0)                        # ReLU in f32

    z3 = jnp.dot(h2.astype(jnp.bfloat16), w3_ref[...],
                 preferred_element_type=jnp.float32) + b3_ref[...]
    h3 = _hardswish(z3)                              # Hardswish in f32

    # Final 1-wide projection: VPU mul + XLU lane reduce instead of N=1 matmul.
    q = jnp.sum(h3 * wq_ref[...], axis=-1, keepdims=True) + bq_ref[...]
    out_ref[...] = q.astype(out_ref.dtype)


def _round_up(x, m):
    return ((x + m - 1) // m) * m


def _choose_tile_b(batch):
    """Batch tile: large tiles (amortize per-step overhead), low boundary waste."""
    if batch <= 512:
        return max(8, _round_up(batch, 8))           # single tile, sublane-aligned
    if batch <= 1024:
        return _round_up((batch + 1) // 2, 8)        # 2 tiles -> both v7x cores
    best_t, best_total = 1024, _round_up(batch, 1024)
    for cand in (768, 512, 384, 256):                # prefer larger tile on ties
        total = _round_up(batch, cand)
        if total < best_total:
            best_t, best_total = cand, total
    return best_t


@jax.jit
def critic_twin_forward(state, action, params):
    """q1 = CriticTwin.forward(state, action). One fused Pallas kernel, no host ops."""
    (w1s, w1a, b1, w2, b2, w3, b3, wq_row, bq) = params
    B, S = state.shape
    A = action.shape[1]
    mid_pad = w2.shape[0]

    tile_b = _choose_tile_b(B)
    num_tiles = pl.cdiv(B, tile_b)
    rows_processed = num_tiles * tile_b

    # Advisory cost hint for XLA scheduling around the custom call.
    flops = 2 * rows_processed * (S * mid_pad + A * mid_pad
                                  + 2 * mid_pad * mid_pad + mid_pad)
    weight_bytes = sum(int(np.prod(p.shape)) * p.dtype.itemsize
                       for p in (w1s, w1a, b1, w2, b2, w3, b3, wq_row, bq))
    bytes_accessed = B * (S + A) * 4 + B * 4 + weight_bytes

    batch_spec = lambda shape: pl.BlockSpec(shape, lambda i: (i, 0))   # streamed
    resident = lambda shape: pl.BlockSpec(shape, lambda i: (0, 0))     # VMEM-resident

    out = pl.pallas_call(
        critic_twin_kernel,
        out_shape=jax.ShapeDtypeStruct((B, 1), jnp.float32),
        grid_spec=pltpu.PrefetchScalarGridSpec(
            num_scalar_prefetch=0,
            grid=(num_tiles,),
            in_specs=[
                batch_spec((tile_b, S)),            # state tile   (f32, streamed)
                batch_spec((tile_b, A)),            # action tile  (f32, streamed)
                resident((S, mid_pad)),             # W1[:S]       (bf16, resident)
                resident((A, mid_pad)),             # W1[S:]       (bf16, resident)
                resident((1, mid_pad)),             # b1
                resident((mid_pad, mid_pad)),       # W2
                resident((1, mid_pad)),             # b2
                resident((mid_pad, mid_pad)),       # W3
                resident((1, mid_pad)),             # b3
                resident((1, mid_pad)),             # wq row (f32)
                resident((1, 1)),                   # bq
            ],
            out_specs=pl.BlockSpec((tile_b, 1), lambda i: (i, 0)),
        ),
        compiler_params=pltpu.CompilerParams(
            dimension_semantics=("parallel",),      # shard batch tiles across TCs
        ),
        cost_estimate=pl.CostEstimate(
            flops=flops, transcendentals=0, bytes_accessed=bytes_accessed),
    )(state, action, w1s, w1a, b1, w2, b2, w3, b3, wq_row, bq)
    return out


def _orthogonal(key, rows, cols, gain):
    """Deterministic orthogonal init (matches torch.nn.init.orthogonal_ semantics)."""
    n, m = max(rows, cols), min(rows, cols)
    a = jax.random.normal(key, (n, m), dtype=jnp.float32)
    q, r = jnp.linalg.qr(a)
    q = q * jnp.sign(jnp.diagonal(r))[None, :]
    q = q[:rows, :cols] if rows >= cols else q.T[:rows, :cols]
    return gain * q


def make_params(key, state_dim, action_dim, mid_dim):
    """CriticTwin(if_use_dn=False) params, pre-split/padded/cast for the kernel.

    Weights are stored [in, out] (transposed from torch), zero-padded to a
    lane-dense 128-wide feature axis, and cast to bf16 for the MXU; biases and
    the final projection row stay f32.
    """
    in_dim = state_dim + action_dim
    mid_pad = ((mid_dim + LANE - 1) // LANE) * LANE
    ks = jax.random.split(key, 4)

    def torch_linear(k, fan_in, fan_out, gain, bias_const):
        w = _orthogonal(k, fan_out, fan_in, gain)          # torch layout [out, in]
        b = jnp.full((1, fan_out), bias_const, jnp.float32)
        return w.T, b                                      # -> [in, out]

    w1, b1 = torch_linear(ks[0], in_dim, mid_dim, 1.0, 0.0)
    w2, b2 = torch_linear(ks[1], mid_dim, mid_dim, 1.0, 0.0)
    w3, b3 = torch_linear(ks[2], mid_dim, mid_dim, 1.0, 0.0)
    wq, bq = torch_linear(ks[3], mid_dim, 1, 0.1, 1e-6)    # net_q1: layer_norm(std=0.1)

    pad_c = lambda x, c: jnp.pad(x, ((0, 0), (0, c - x.shape[1])))
    pad_r = lambda x, r: jnp.pad(x, ((0, r - x.shape[0]), (0, 0)))

    w1s = pad_c(w1[:state_dim], mid_pad).astype(jnp.bfloat16)    # [S, mid_pad]
    w1a = pad_c(w1[state_dim:], mid_pad).astype(jnp.bfloat16)    # [A, mid_pad]
    b1p = pad_c(b1, mid_pad)
    w2p = pad_c(pad_r(w2, mid_pad), mid_pad).astype(jnp.bfloat16)
    b2p = pad_c(b2, mid_pad)
    w3p = pad_c(pad_r(w3, mid_pad), mid_pad).astype(jnp.bfloat16)
    b3p = pad_c(b3, mid_pad)
    wq_row = pad_c(wq.T, mid_pad)                                # [1, mid_pad] f32
    bq_s = bq.reshape(1, 1)                                      # [1, 1] f32
    return (w1s, w1a, b1p, w2p, b2p, w3p, b3p, wq_row, bq_s)


def _reference(state, action, params):
    """Pure-JAX reference with the same bf16 operand rounding (for verification)."""
    (w1s, w1a, b1, w2, b2, w3, b3, wq_row, bq) = params
    f32 = jnp.float32
    s = state.astype(jnp.bfloat16).astype(f32)
    a = action.astype(jnp.bfloat16).astype(f32)
    z1 = s @ w1s.astype(f32) + a @ w1a.astype(f32) + b1
    h1 = jnp.maximum(z1, 0.0)
    z2 = h1.astype(jnp.bfloat16).astype(f32) @ w2.astype(f32) + b2
    h2 = jnp.maximum(z2, 0.0)
    z3 = h2.astype(jnp.bfloat16).astype(f32) @ w3.astype(f32) + b3
    h3 = z3 * jnp.clip(z3 + 3.0, 0.0, 6.0) / 6.0
    return jnp.sum(h3 * wq_row, axis=-1, keepdims=True) + bq


if __name__ == "__main__":
    key = jax.random.PRNGKey(0)
    k_s, k_a, k_p, k_s2, k_a2 = jax.random.split(key, 5)

    batch, state_dim, action_dim, mid_dim = 8, 16, 8, 32
    params = make_params(k_p, state_dim, action_dim, mid_dim)

    # Small-shape check (single grid step, exact tile).
    state = jax.random.normal(k_s, (batch, state_dim), dtype=jnp.float32)
    action = jax.random.normal(k_a, (batch, action_dim), dtype=jnp.float32)
    q1 = jax.block_until_ready(critic_twin_forward(state, action, params))
    ref = jax.block_until_ready(_reference(state, action, params))
    assert q1.shape == (batch, 1)
    np.testing.assert_allclose(np.asarray(q1), np.asarray(ref), rtol=1e-3, atol=1e-3)

    # Multi-tile grid + non-divisible boundary block (exercises OOB masking path).
    big_b = 1500
    state2 = jax.random.normal(k_s2, (big_b, state_dim), dtype=jnp.float32)
    action2 = jax.random.normal(k_a2, (big_b, action_dim), dtype=jnp.float32)
    q1_big = jax.block_until_ready(critic_twin_forward(state2, action2, params))
    ref_big = jax.block_until_ready(_reference(state2, action2, params))
    assert q1_big.shape == (big_b, 1)
    np.testing.assert_allclose(np.asarray(q1_big), np.asarray(ref_big),
                               rtol=1e-3, atol=1e-3)

    print("KERNEL_OK")
</pallas_src>

<mosaic_0001>
module attributes {stable_mosaic.version = 11 : i64} {
  func.func @critic_twin_kernel(%arg0: i32, %arg1: memref<8x16xf32, #tpu.memory_space<vmem>>, %arg2: memref<8x8xf32, #tpu.memory_space<vmem>>, %arg3: memref<16x128xbf16, #tpu.memory_space<vmem>>, %arg4: memref<8x128xbf16, #tpu.memory_space<vmem>>, %arg5: memref<1x128xf32, #tpu.memory_space<vmem>>, %arg6: memref<128x128xbf16, #tpu.memory_space<vmem>>, %arg7: memref<1x128xf32, #tpu.memory_space<vmem>>, %arg8: memref<128x128xbf16, #tpu.memory_space<vmem>>, %arg9: memref<1x128xf32, #tpu.memory_space<vmem>>, %arg10: memref<1x128xf32, #tpu.memory_space<vmem>>, %arg11: memref<1x1xf32, #tpu.memory_space<vmem>>, %arg12: memref<8x1xf32, #tpu.memory_space<vmem>>) attributes {dimension_semantics = [#tpu.dimension_semantics<parallel>], iteration_bounds = array<i64: 1>, scalar_prefetch = 0 : i64, scratch_operands = 0 : i64, tpu.core_type = #tpu.core_type<tc>, window_params = [{transform_indices = @transform_0, window_bounds = array<i64: 8, 16>}, {transform_indices = @transform_1, window_bounds = array<i64: 8, 8>}, {pipeline_mode = #tpu.pipeline_mode<synchronous>, transform_indices = @transform_2, window_bounds = array<i64: 16, 128>}, {pipeline_mode = #tpu.pipeline_mode<synchronous>, transform_indices = @transform_3, window_bounds = array<i64: 8, 128>}, {pipeline_mode = #tpu.pipeline_mode<synchronous>, transform_indices = @transform_4, window_bounds = array<i64: 1, 128>}, {pipeline_mode = #tpu.pipeline_mode<synchronous>, transform_indices = @transform_5, window_bounds = array<i64: 128, 128>}, {pipeline_mode = #tpu.pipeline_mode<synchronous>, transform_indices = @transform_6, window_bounds = array<i64: 1, 128>}, {pipeline_mode = #tpu.pipeline_mode<synchronous>, transform_indices = @transform_7, window_bounds = array<i64: 128, 128>}, {pipeline_mode = #tpu.pipeline_mode<synchronous>, transform_indices = @transform_8, window_bounds = array<i64: 1, 128>}, {pipeline_mode = #tpu.pipeline_mode<synchronous>, transform_indices = @transform_9, window_bounds = array<i64: 1, 128>}, {pipeline_mode = #tpu.pipeline_mode<synchronous>, transform_indices = @transform_10, window_bounds = array<i64: 1, 1>}, {transform_indices = @transform_11, window_bounds = array<i64: 8, 1>}]} {
    %c0 = arith.constant 0 : index
    %c0_0 = arith.constant 0 : index
    %0 = vector.load %arg1[%c0, %c0_0] : memref<8x16xf32, #tpu.memory_space<vmem>>, vector<8x16xf32>
    %1 = arith.truncf %0 : vector<8x16xf32> to vector<8x16xbf16>
    %c0_1 = arith.constant 0 : index
    %c0_2 = arith.constant 0 : index
    %2 = vector.load %arg2[%c0_1, %c0_2] : memref<8x8xf32, #tpu.memory_space<vmem>>, vector<8x8xf32>
    %3 = arith.truncf %2 : vector<8x8xf32> to vector<8x8xbf16>
    %c0_3 = arith.constant 0 : index
    %c0_4 = arith.constant 0 : index
    %4 = vector.load %arg3[%c0_3, %c0_4] : memref<16x128xbf16, #tpu.memory_space<vmem>>, vector<16x128xbf16>
    %cst = arith.constant dense<0.000000e+00> : vector<8x128xf32>
    %5 = tpu.matmul %1, %4, %cst {dimension_numbers = #tpu.dot_dimension_numbers<[1], [0], [0], [1], [0, 0, 1, 1], [], []>} : vector<8x16xbf16>, vector<16x128xbf16>, vector<8x128xf32> -> vector<8x128xf32>
    %c0_5 = arith.constant 0 : index
    %c0_6 = arith.constant 0 : index
    %6 = vector.load %arg4[%c0_5, %c0_6] : memref<8x128xbf16, #tpu.memory_space<vmem>>, vector<8x128xbf16>
    %cst_7 = arith.constant dense<0.000000e+00> : vector<8x128xf32>
    %7 = tpu.matmul %3, %6, %cst_7 {dimension_numbers = #tpu.dot_dimension_numbers<[1], [0], [0], [1], [0, 0, 1, 1], [], []>} : vector<8x8xbf16>, vector<8x128xbf16>, vector<8x128xf32> -> vector<8x128xf32>
    %8 = arith.addf %5, %7 : vector<8x128xf32>
    %c0_8 = arith.constant 0 : index
    %c0_9 = arith.constant 0 : index
    %9 = vector.load %arg5[%c0_8, %c0_9] : memref<1x128xf32, #tpu.memory_space<vmem>>, vector<1x128xf32>
    %10 = vector.broadcast %9 : vector<1x128xf32> to vector<8x128xf32>
    %11 = arith.addf %8, %10 : vector<8x128xf32>
    %cst_10 = arith.constant 0.000000e+00 : f32
    %12 = vector.broadcast %cst_10 : f32 to vector<8x128xf32>
    %13 = arith.maximumf %11, %12 : vector<8x128xf32>
    %14 = arith.truncf %13 : vector<8x128xf32> to vector<8x128xbf16>
    %c0_11 = arith.constant 0 : index
    %c0_12 = arith.constant 0 : index
    %15 = vector.load %arg6[%c0_11, %c0_12] : memref<128x128xbf16, #tpu.memory_space<vmem>>, vector<128x128xbf16>
    %cst_13 = arith.constant dense<0.000000e+00> : vector<8x128xf32>
    %16 = tpu.matmul %14, %15, %cst_13 {dimension_numbers = #tpu.dot_dimension_numbers<[1], [0], [0], [1], [0, 0, 1, 1], [], []>} : vector<8x128xbf16>, vector<128x128xbf16>, vector<8x128xf32> -> vector<8x128xf32>
    %c0_14 = arith.constant 0 : index
    %c0_15 = arith.constant 0 : index
    %17 = vector.load %arg7[%c0_14, %c0_15] : memref<1x128xf32, #tpu.memory_space<vmem>>, vector<1x128xf32>
    %18 = vector.broadcast %17 : vector<1x128xf32> to vector<8x128xf32>
    %19 = arith.addf %16, %18 : vector<8x128xf32>
    %cst_16 = arith.constant 0.000000e+00 : f32
    %20 = vector.broadcast %cst_16 : f32 to vector<8x128xf32>
    %21 = arith.maximumf %19, %20 : vector<8x128xf32>
    %22 = arith.truncf %21 : vector<8x128xf32> to vector<8x128xbf16>
    %c0_17 = arith.constant 0 : index
    %c0_18 = arith.constant 0 : index
    %23 = vector.load %arg8[%c0_17, %c0_18] : memref<128x128xbf16, #tpu.memory_space<vmem>>, vector<128x128xbf16>
    %cst_19 = arith.constant dense<0.000000e+00> : vector<8x128xf32>
    %24 = tpu.matmul %22, %23, %cst_19 {dimension_numbers = #tpu.dot_dimension_numbers<[1], [0], [0], [1], [0, 0, 1, 1], [], []>} : vector<8x128xbf16>, vector<128x128xbf16>, vector<8x128xf32> -> vector<8x128xf32>
    %c0_20 = arith.constant 0 : index
    %c0_21 = arith.constant 0 : index
    %25 = vector.load %arg9[%c0_20, %c0_21] : memref<1x128xf32, #tpu.memory_space<vmem>>, vector<1x128xf32>
    %26 = vector.broadcast %25 : vector<1x128xf32> to vector<8x128xf32>
    %27 = arith.addf %24, %26 : vector<8x128xf32>
    %cst_22 = arith.constant 3.000000e+00 : f32
    %28 = vector.broadcast %cst_22 : f32 to vector<8x128xf32>
    %29 = arith.addf %27, %28 : vector<8x128xf32>
    %cst_23 = arith.constant 0.000000e+00 : f32
    %cst_24 = arith.constant 6.000000e+00 : f32
    %30 = vector.broadcast %cst_23 : f32 to vector<8x128xf32>
    %31 = arith.maximumf %30, %29 : vector<8x128xf32>
    %32 = vector.broadcast %cst_24 : f32 to vector<8x128xf32>
    %33 = arith.minimumf %32, %31 : vector<8x128xf32>
    %34 = arith.mulf %27, %33 : vector<8x128xf32>
    %cst_25 = arith.constant 0.166666672 : f32
    %35 = vector.broadcast %cst_25 : f32 to vector<8x128xf32>
    %36 = arith.mulf %34, %35 : vector<8x128xf32>
    %c0_26 = arith.constant 0 : index
    %c0_27 = arith.constant 0 : index
    %37 = vector.load %arg10[%c0_26, %c0_27] : memref<1x128xf32, #tpu.memory_space<vmem>>, vector<1x128xf32>
    %38 = vector.broadcast %37 : vector<1x128xf32> to vector<8x128xf32>
    %39 = arith.mulf %36, %38 : vector<8x128xf32>
    %cst_28 = arith.constant dense<0.000000e+00> : vector<8xf32>
    %40 = vector.multi_reduction <add>, %39, %cst_28 [1] : vector<8x128xf32> to vector<8xf32>
    %41 = vector.shape_cast %40 : vector<8xf32> to vector<8x1xf32>
    %c0_29 = arith.constant 0 : index
    %c0_30 = arith.constant 0 : index
    %42 = vector.load %arg11[%c0_29, %c0_30] : memref<1x1xf32, #tpu.memory_space<vmem>>, vector<1x1xf32>
    %43 = vector.broadcast %42 : vector<1x1xf32> to vector<8x1xf32>
    %44 = arith.addf %41, %43 : vector<8x1xf32>
    %c0_31 = arith.constant 0 : index
    %c0_32 = arith.constant 0 : index
    %45 = vector.load %arg12[%c0_31, %c0_32] : memref<8x1xf32, #tpu.memory_space<vmem>>, vector<8x1xf32>
    tpu.vector_store %arg12[%c0_31, %c0_32], %44 {strides = array<i32>} : memref<8x1xf32, #tpu.memory_space<vmem>>, vector<8x1xf32>,
    return
  }
  func.func @transform_0(%arg0: i32) -> (i32, i32) {
    %c0_i32 = arith.constant 0 : i32
    %c0_i32_0 = arith.constant 0 : i32
    return %arg0, %c0_i32 : i32, i32
  }
  func.func @transform_1(%arg0: i32) -> (i32, i32) {
    %c0_i32 = arith.constant 0 : i32
    %c0_i32_0 = arith.constant 0 : i32
    return %arg0, %c0_i32 : i32, i32
  }
  func.func @transform_2(%arg0: i32) -> (i32, i32) {
    %c0_i32 = arith.constant 0 : i32
    %c0_i32_0 = arith.constant 0 : i32
    %c0_i32_1 = arith.constant 0 : i32
    return %c0_i32, %c0_i32_0 : i32, i32
  }
  func.func @transform_3(%arg0: i32) -> (i32, i32) {
    %c0_i32 = arith.constant 0 : i32
    %c0_i32_0 = arith.constant 0 : i32
    %c0_i32_1 = arith.constant 0 : i32
    return %c0_i32, %c0_i32_0 : i32, i32
  }
  func.func @transform_4(%arg0: i32) -> (i32, i32) {
    %c0_i32 = arith.constant 0 : i32
    %c0_i32_0 = arith.constant 0 : i32
    %c0_i32_1 = arith.constant 0 : i32
    return %c0_i32, %c0_i32_0 : i32, i32
  }
  func.func @transform_5(%arg0: i32) -> (i32, i32) {
    %c0_i32 = arith.constant 0 : i32
    %c0_i32_0 = arith.constant 0 : i32
    %c0_i32_1 = arith.constant 0 : i32
    return %c0_i32, %c0_i32_0 : i32, i32
  }
  func.func @transform_6(%arg0: i32) -> (i32, i32) {
    %c0_i32 = arith.constant 0 : i32
    %c0_i32_0 = arith.constant 0 : i32
    %c0_i32_1 = arith.constant 0 : i32
    return %c0_i32, %c0_i32_0 : i32, i32
  }
  func.func @transform_7(%arg0: i32) -> (i32, i32) {
    %c0_i32 = arith.constant 0 : i32
    %c0_i32_0 = arith.constant 0 : i32
    %c0_i32_1 = arith.constant 0 : i32
    return %c0_i32, %c0_i32_0 : i32, i32
  }
  func.func @transform_8(%arg0: i32) -> (i32, i32) {
    %c0_i32 = arith.constant 0 : i32
    %c0_i32_0 = arith.constant 0 : i32
    %c0_i32_1 = arith.constant 0 : i32
    return %c0_i32, %c0_i32_0 : i32, i32
  }
  func.func @transform_9(%arg0: i32) -> (i32, i32) {
    %c0_i32 = arith.constant 0 : i32
    %c0_i32_0 = arith.constant 0 : i32
    %c0_i32_1 = arith.constant 0 : i32
    return %c0_i32, %c0_i32_0 : i32, i32
  }
  func.func @transform_10(%arg0: i32) -> (i32, i32) {
    %c0_i32 = arith.constant 0 : i32
    %c0_i32_0 = arith.constant 0 : i32
    %c0_i32_1 = arith.constant 0 : i32
    return %c0_i32, %c0_i32_0 : i32, i32
  }
  func.func @transform_11(%arg0: i32) -> (i32, i32) {
    %c0_i32 = arith.constant 0 : i32
    %c0_i32_0 = arith.constant 0 : i32
    return %arg0, %c0_i32 : i32, i32
  }
}

</mosaic_0001>

<bundles_post_ra>
// kernel: critic_twin_forward.1
= control target key start
LH: loop header
LB: loop body
LE: loop exit
PB: predicated region body
PF: predicated region fallthrough
CT: control target
= control target key end

     0   :  { %s846_s0 = inlined_call_operand.hbm [shape: f32[8,16], index: 0, kind: input, shape index: {}]   ;;  %s847_s1 = inlined_call_operand.hbm [shape: f32[8,8], index: 1, kind: input, shape index: {}]   ;;  %s848_s2 = inlined_call_operand.vmem [shape: bf16[16,128], index: 2, kind: input, shape index: {}]   ;;  %s849_s3 = inlined_call_operand.vmem [shape: bf16[8,128], index: 3, kind: input, shape index: {}]   ;;  %s850_s4 = inlined_call_operand.vmem [shape: f32[1,128], index: 4, kind: input, shape index: {}]   ;;  %s851_s5 = inlined_call_operand.hbm [shape: bf16[128,128], index: 5, kind: input, shape index: {}]   ;;  %s852_s6 = inlined_call_operand.vmem [shape: f32[1,128], index: 6, kind: input, shape index: {}]   ;;  %s853_s7 = inlined_call_operand.hbm [shape: bf16[128,128], index: 7, kind: input, shape index: {}]   ;;  %s854_s8 = inlined_call_operand.vmem [shape: f32[1,128], index: 8, kind: input, shape index: {}]   ;;  %s855_s9 = inlined_call_operand.vmem [shape: f32[1,128], index: 9, kind: input, shape index: {}]   ;;  %s856_s10 = inlined_call_operand.<no memory space> [shape: f32[1,1], index: 10, kind: input, shape index: {}]   ;;  %s857_s11 = inlined_call_operand.vmem [shape: f32[8,1], index: 11, kind: output, shape index: {}]  }
   0x1   :  { %v16_v0 = vstv %s856_s10 }
   0x2   :  { %17 = vst [vmem:[#allocation2] sm:$0x1] %v16_v0 }
   0x3   :  { %18 = vsyncpa [#allocation4], 0 }
   0x4   :  { %19 = vsyncpa [#allocation6], 0 }
   0x5   :  { %20 = vsyncpa [#allocation9], 0  ;;  %s680_s19 = smov [#allocation5]   ;;  %s681_s21 = smov [#allocation3]  }
   0x6   :  { %s37_s20 = sshll.u32 %s680_s19, 4  ;;  %s27_s22 = sshll.u32 %s681_s21, 4  ;;  %s38_s20 = int_to_ptr.vmem [resolvable:$true] %s37_s20  ;;  %s28_s22 = int_to_ptr.vmem [resolvable:$true] %s27_s22 }
   0x7   :  { %s586_s25 = scalar_lea.hbm %s847_s1, 128 }
   0x8   :  { %p587_p0 = scmp.ne.s32.totalorder %s847_s1, %s586_s25  ;;  %p590_p1 = scmp.lt.u32.totalorder %s586_s25, %s847_s1 }
   0xa   :  { %p592_p2 = pnand %p590_p1, %p587_p0 }
   0xc   :  { %595 = shalt.err (!%p592_p2)
}
   0xd   :  { %s596_s29 = scalar_lea.vmem %s38_s20, 128  ;;  %p601_p4 = scmp.lt.s32.totalorder %s38_s20, %s38_s20 }
   0xe   :  { %p597_p3 = scmp.ne.s32.totalorder %s38_s20, %s596_s29  ;;  %p602_p5 = scmp.lt.s32.totalorder %s596_s29, %s596_s29 }
  0x10   :  { %p603_p6 = por %p602_p5, %p601_p4 }
  0x12   :  { %p604_p7 = pnand %p603_p6, %p597_p3 }
  0x14   :  { %607 = shalt.err (!%p604_p7)
}
  0x15   :  { %40 = dma.hbm_to_vmem [thread:$0]  %s847_s1, 128, %s38_s20, [#allocation6]  }
  0x16   :  { %s608_s15 = scalar_lea.hbm %s846_s0, 128 }
  0x17   :  { %p609_p8 = scmp.ne.s32.totalorder %s846_s0, %s608_s15  ;;  %p612_p9 = scmp.lt.u32.totalorder %s608_s15, %s846_s0 }
  0x19   :  { %p614_p10 = pnand %p612_p9, %p609_p8 }
  0x1b   :  { %617 = shalt.err (!%p614_p10)
}
  0x1c   :  { %s618_s21 = scalar_lea.vmem %s28_s22, 128  ;;  %p623_p12 = scmp.lt.s32.totalorder %s28_s22, %s28_s22 }
  0x1d   :  { %p619_p11 = scmp.ne.s32.totalorder %s28_s22, %s618_s21  ;;  %p624_p13 = scmp.lt.s32.totalorder %s618_s21, %s618_s21 }
  0x1f   :  { %p625_p0 = por %p624_p13, %p623_p12 }
  0x21   :  { %p626_p1 = pnand %p625_p0, %p619_p11 }
  0x23   :  { %629 = shalt.err (!%p626_p1)
}
  0x24   :  { %30 = dma.hbm_to_vmem [thread:$0]  %s846_s0, 128, %s28_s22, [#allocation4]  }
  0x25   :  { %s682_s23 = smov [#allocation7]   ;;  %s630_s27 = scalar_lea.hbm %s851_s5, 1024 }
  0x26   :  { %s52_s24 = sshll.u32 %s682_s23, 4  ;;  %p631_p2 = scmp.ne.s32.totalorder %s851_s5, %s630_s27  ;;  %s53_s24 = int_to_ptr.vmem [resolvable:$true] %s52_s24 }
  0x27   :  { %p634_p3 = scmp.lt.u32.totalorder %s630_s27, %s851_s5 }
  0x29   :  { %p636_p4 = pnand %p634_p3, %p631_p2 }
  0x2b   :  { %639 = shalt.err (!%p636_p4)
}
  0x2c   :  { %s640_s12 = scalar_lea.vmem %s53_s24, 1024  ;;  %p645_p6 = scmp.lt.s32.totalorder %s53_s24, %s53_s24 }
  0x2d   :  { %p641_p5 = scmp.ne.s32.totalorder %s53_s24, %s640_s12  ;;  %p646_p7 = scmp.lt.s32.totalorder %s640_s12, %s640_s12 }
  0x2f   :  { %p647_p8 = por %p646_p7, %p645_p6 }
  0x31   :  { %p648_p9 = pnand %p647_p8, %p641_p5 }
  0x33   :  { %651 = shalt.err (!%p648_p9)
}
  0x34   :  { %s683_s0 = smov 64   ;;  %s684_s22 = smov 4  }
  0x35   :  { %58 = dma.hbm_to_vmem [thread:$0]  %s851_s5, 1024, %s53_s24, [#allocation6], %s683_s0, %s683_s0, %s684_s22  }
  0x36   :  { %s685_s15 = smov [#allocation8]   ;;  %s652_s19 = scalar_lea.hbm %s853_s7, 1024 }
  0x37   :  { %s66_s16 = sshll.u32 %s685_s15, 4  ;;  %p653_p10 = scmp.ne.s32.totalorder %s853_s7, %s652_s19  ;;  %s67_s16 = int_to_ptr.vmem [resolvable:$true] %s66_s16 }
  0x38   :  { %p656_p11 = scmp.lt.u32.totalorder %s652_s19, %s853_s7 }
  0x3a   :  { %p658_p12 = pnand %p656_p11, %p653_p10 }
  0x3c   :  { %661 = shalt.err (!%p658_p12)
}
  0x3d   :  { %s662_s25 = scalar_lea.vmem %s67_s16, 1024  ;;  %p667_p0 = scmp.lt.s32.totalorder %s67_s16, %s67_s16 }
  0x3e   :  { %p663_p13 = scmp.ne.s32.totalorder %s67_s16, %s662_s25  ;;  %p668_p1 = scmp.lt.s32.totalorder %s662_s25, %s662_s25 }
  0x40   :  { %p669_p2 = por %p668_p1, %p667_p0 }
  0x42   :  { %p670_p3 = pnand %p669_p2, %p663_p13 }
  0x44   :  { %673 = shalt.err (!%p670_p3)
}
  0x45   :  { %72 = dma.hbm_to_vmem [thread:$0]  %s853_s7, 1024, %s67_s16, [#allocation9], %s683_s0, %s683_s0, %s684_s22  }
  0x46   :  { %674 = dma.done.wait [#allocation4], 128  }
  0x47   :  { %675 = vsyncadd [#allocation4], 4294967168 }
  0x48   :  { %676 = dma.done.wait [#allocation6], 1152  }
  0x49   :  { %677 = vsyncadd [#allocation6], 4294966144 }
  0x4a   :  { %678 = dma.done.wait [#allocation9], 1024  }
  0x4b   :  { %679 = vsyncadd [#allocation9], 4294966272  ;;  %v686_v1 = vmov 0.0   ;;  %vm687_vm0 = vmmov 0   ;;  %vm103_vm1 = vcmask 1043456   ;;  %v569_v4 = vld [vmem:[%s848_s2] sm:$0xff]  }
  0x4c   :  { %509 = vmatprep.subr.bf16.mxu0 %v686_v1  ;;  %515 = vmatprep.subr.bf16.mxu1 %v686_v1  ;;  %v98_v2 = vld [vmem:[%s849_s3] sm:$0xf]  ;;  %v94_v5 = vld [vmem:[#allocation5] sm:$0xff]  ;;  %vm99_vm2 = vcmask 64512   ;;  %v570_v9 = vld [vmem:[#allocation7] sm:$0xff]   ;;  %vm153_vm3 = vcmask 130048  }
  0x4d   :  { %511 = vmatprep.mubr.msk.bf16.mxu0 %vm687_vm0, %v686_v1  ;;  %517 = vmatprep.mubr.msk.bf16.mxu1 %vm687_vm0, %v686_v1  ;;  %v105_v3 = vsel %vm103_vm1, %v98_v2, 0  ;;  %v92_v6 = vld [vmem:[#allocation3] sm:$0xff]  ;;  %v95_v7 = vpack.c.bf16 %v94_v5, %v94_v5  ;;  %v571_v10 = vld [vmem:[#allocation7 + $0x8] sm:$0xff]   ;;  %v573_v12 = vld [vmem:[#allocation7 + $0x18] sm:$0xff]   ;;  %vm454_vm4 = vcmask 7168  }
  0x4e   :  { %510 = vmatpush3.bf16.msra.mxu0 %v105_v3  ;;  %v93_v8 = vpack.c.bf16 %v92_v6, %v92_v6  ;;  %516 = vmatpush3.bf16.msra.mxu1 %v569_v4  ;;  %v572_v11 = vld [vmem:[#allocation7 + $0x10] sm:$0xff]   ;;  %v574_v13 = vld [vmem:[#allocation7 + $0x20] sm:$0xff]   ;;  %v575_v14 = vld [vmem:[#allocation7 + $0x28] sm:$0xff]  }
  0x4f   :  { %521 = vmatprep.subr.bf16.mxu0 %v686_v1  ;;  %541 = vmatprep.subr.bf16.mxu1 %v686_v1  ;;  %v576_v15 = vld [vmem:[#allocation7 + $0x30] sm:$0xff]   ;;  %v577_v16 = vld [vmem:[#allocation7 + $0x38] sm:$0xff]   ;;  %v578_v17 = vld [vmem:[#allocation8] sm:$0xff]  }
  0x50   :  { %v579_v18 = vld [vmem:[#allocation8 + $0x8] sm:$0xff]   ;;  %v580_v19 = vld [vmem:[#allocation8 + $0x10] sm:$0xff]   ;;  %v581_v20 = vld [vmem:[#allocation8 + $0x18] sm:$0xff]  }
  0x51   :  { %512 = vmatmul.mubr.msk.bf16.vlgmr.msra.gmra.mrb[0].mxu0 %vm99_vm2, %v95_v7  ;;  %518 = vmatmul.mubr.msk.bf16.vlgmr.msra.gmra.mrb[0].mxu1 %vm153_vm3, %v93_v8  ;;  %v582_v21 = vld [vmem:[#allocation8 + $0x20] sm:$0xff]   ;;  %v583_v22 = vld [vmem:[#allocation8 + $0x28] sm:$0xff]   ;;  %v584_v36 = vld [vmem:[#allocation8 + $0x30] sm:$0xff]  }
  0x52   :  { %522 = vmatpush3.bf16.msra.mxu0 %v570_v9  ;;  %537 = vmatprep.mubr.msk.bf16.mxu0 %vm687_vm0, %v686_v1  ;;  %v466_v26 = vld [vmem:[%s850_s4] ss:$0 sm:$0xff]  ;;  %v585_v37 = vld [vmem:[#allocation8 + $0x38] sm:$0xff]  }
  0x53   :  { %523 = vmatprep.subr.bf16.mxu0 %v686_v1  ;;  %557 = vmatprep.mubr.msk.bf16.mxu1 %vm687_vm0, %v686_v1  ;;  %v467_v38 = vld [vmem:[%s852_s6] ss:$0 sm:$0xff] }
  0x54   :  { %542 = vmatpush3.bf16.msra.mxu1 %v578_v17  ;;  %v476_v46 = vld [vmem:[%s854_s8] ss:$0 sm:$0xff] }
  0x55   :  { %543 = vmatprep.subr.bf16.mxu1 %v686_v1  ;;  %v485_v56 = vld [vmem:[%s855_s9] ss:$0 sm:$0xff] }
  0x56   :  { %524 = vmatpush3.bf16.msra.mxu0 %v571_v10  ;;  %v486_v59 = vld [vmem:[#allocation2] ss:$0 sm:$0xff] }
  0x57   :  { %525 = vmatprep.subr.bf16.mxu0 %v686_v1 }
  0x58   :  { %544 = vmatpush3.bf16.msra.mxu1 %v579_v18 }
  0x59   :  { %545 = vmatprep.subr.bf16.mxu1 %v686_v1 }
  0x5a   :  { %526 = vmatpush3.bf16.msra.mxu0 %v572_v11 }
  0x5b   :  { %527 = vmatprep.subr.bf16.mxu0 %v686_v1 }
  0x5c   :  { %546 = vmatpush3.bf16.msra.mxu1 %v580_v19 }
  0x5d   :  { %547 = vmatprep.subr.bf16.mxu1 %v686_v1 }
  0x5e   :  { %528 = vmatpush3.bf16.msra.mxu0 %v573_v12 }
  0x5f   :  { %529 = vmatprep.subr.bf16.mxu0 %v686_v1 }
  0x60   :  { %548 = vmatpush3.bf16.msra.mxu1 %v581_v20 }
  0x61   :  { %549 = vmatprep.subr.bf16.mxu1 %v686_v1 }
  0x62   :  { %530 = vmatpush3.bf16.msra.mxu0 %v574_v13 }
  0x63   :  { %531 = vmatprep.subr.bf16.mxu0 %v686_v1 }
  0x64   :  { %550 = vmatpush3.bf16.msra.mxu1 %v582_v21 }
  0x65   :  { %551 = vmatprep.subr.bf16.mxu1 %v686_v1 }
  0x66   :  { %532 = vmatpush3.bf16.msra.mxu0 %v575_v14 }
  0x67   :  { %533 = vmatprep.subr.bf16.mxu0 %v686_v1 }
  0x68   :  { %552 = vmatpush3.bf16.msra.mxu1 %v583_v22 }
  0x69   :  { %553 = vmatprep.subr.bf16.mxu1 %v686_v1 }
  0x6a   :  { %534 = vmatpush3.bf16.msra.mxu0 %v576_v15 }
  0x6b   :  { %535 = vmatprep.subr.bf16.mxu0 %v686_v1 }
  0x6c   :  { %554 = vmatpush3.bf16.msra.mxu1 %v584_v36 }
  0x6d   :  { %555 = vmatprep.subr.bf16.mxu1 %v686_v1 }
  0x6e   :  { %536 = vmatpush3.bf16.msra.mxu0 %v577_v16 }
  0x70   :  { %556 = vmatpush3.bf16.msra.mxu1 %v585_v37 }
 0x124   :  { %v141_v23 = vpop.f32.mrb[0].mxu0  ;;  %v191_v25 = vpop.f32.mrb[0].mxu1 }
 0x125   :  { %v513_v24 = vpop.f32.mrb[1].mxu0  ;;  %v192_v27 = vadd.f32 %v191_v25, %v141_v23  ;;  %v519_v29 = vpop.f32.mrb[1].mxu1 }
 0x126   :  { %v144_v28 = vpop.f32.mrb[2].mxu0  ;;  %v194_v31 = vpop.f32.mrb[2].mxu1 }
 0x127   :  { %v514_v30 = vpop.f32.mrb[3].mxu0  ;;  %v204_v32 = vadd.f32 %v466_v26, %v192_v27  ;;  %v520_v33 = vpop.f32.mrb[3].mxu1 }
 0x129   :  { %v205_v34 = vmax.f32 %v204_v32, 0.0 }
 0x12b   :  { %v206_v35 = vpack.c.bf16 %v205_v34, %v205_v34 }
 0x12d   :  { %538 = vmatmul.mubr.bf16.vlgmr.msra.gmra.mrb[4].mxu0 %v206_v35 }
 0x200   :  { %v312_v39 = vpop.f32.mrb[4].mxu0 }
 0x201   :  { %v313_v40 = vadd.f32 %v467_v38, %v312_v39  ;;  %v539_v41 = vpop.f32.mrb[5].mxu0 }
 0x202   :  { %v315_v42 = vpop.f32.mrb[6].mxu0 }
 0x203   :  { %v318_v43 = vmax.f32 %v313_v40, 0.0  ;;  %v540_v44 = vpop.f32.mrb[7].mxu0 }
 0x205   :  { %v319_v45 = vpack.c.bf16 %v318_v43, %v318_v43 }
 0x207   :  { %558 = vmatmul.mubr.bf16.vlgmr.msra.gmra.mrb[4].mxu1 %v319_v45 }
 0x2da   :  { %v425_v47 = vpop.f32.mrb[4].mxu1 }
 0x2db   :  { %v426_v48 = vadd.f32 %v476_v46, %v425_v47  ;;  %v559_v49 = vpop.f32.mrb[5].mxu1 }
 0x2dc   :  { %v428_v50 = vpop.f32.mrb[6].mxu1 }
 0x2dd   :  { %v431_v51 = vadd.f32 3.0, %v426_v48  ;;  %v560_v52 = vpop.f32.mrb[7].mxu1 }
 0x2df   :  { %v432_v53 = vmax.f32 %v431_v51, 0.0 }
 0x2e1   :  { %v433_v54 = vmin.f32 %v432_v53, 6.0 }
 0x2e3   :  { %v434_v55 = vmul.f32 %v433_v54, %v426_v48 }
 0x2e5   :  { %v435_v57 = vmul.f32 0.16666667, %v434_v55 }
 0x2e7   :  { %v443_v58 = vmul.f32 %v485_v56, %v435_v57 }
 0x2e9   :  { %444 = vadd.xlane.f32.xlu0 %v443_v58 }
 0x376   :  { %v445_v60 = vpop.xlane.xlu0 %444 }
 0x377   :  { %v453_v61 = vadd.f32 %v486_v59, %v445_v60 }
 0x379   :  { %455 = vst.msk [vmem:[%s857_s11] sm:$0xff] %vm454_vm4, %v453_v61 }
 0x37a   :  { %460 = vsyncpa [#allocation4], 1 }
 0x37b   :  { %461 = vsyncpa [#allocation6], 1 }
 0x37c   :  { %462 = vsyncpa [#allocation9], 1 }

</bundles_post_ra>
